<compile_context>
chip_gen: v7x
topology: tpu7x:2x2x1
jax: 0.10.0
libtpu: 0.0.40
codegen_flags: <defaults>
</compile_context>

<pallas_src>
import functools

import jax
import jax.numpy as jnp
from jax.experimental import pallas as pl
from jax.experimental.pallas import tpu as pltpu


def _fastformer_kernel(xs_ref, wqk_ref, bqk_ref, wv_ref, bv_ref,
                       w1_ref, b1_ref, w2_ref, b2_ref, o_ref,
                       *, head_dim, num_heads_padded):
    Bt, Ep = xs_ref.shape
    mm_dtype = wqk_ref.dtype

    xs = xs_ref[...].astype(mm_dtype)                          # (Bt, Ep)

    # Folded projections of the pre-reduced rows (exact by linearity):
    #   qk_sum = x_sum @ (Wq+Wk)^T + S*(bq+bk);  v_sum = x_sum @ Wv^T + S*bv
    qk_sum = jnp.dot(xs, wqk_ref[...],
                     preferred_element_type=jnp.float32) + bqk_ref[...]
    v_sum = jnp.dot(xs, wv_ref[...],
                    preferred_element_type=jnp.float32) + bv_ref[...]

    # Per-head softmax over head_dim, done on the flat (Bt, Ep) layout.
    # Lane j belongs to head j // head_dim; padded lanes (>= E) fall into
    # dummy heads that never mix with real ones.  A per-HEAD max guarantees
    # denom >= 1 (no underflow / NaN).  Pure VPU/XLU work, no MXU matmul.
    Hp = num_heads_padded
    row = jax.lax.broadcasted_iota(jnp.int32, (Hp, Ep), 0)
    col = jax.lax.broadcasted_iota(jnp.int32, (Hp, Ep), 1)
    start = row * head_dim
    memb = (col >= start) & (col < start + head_dim)            # (Hp, Ep)

    memb3 = jnp.broadcast_to(memb[None, :, :], (Bt, Hp, Ep))
    qk3 = jnp.broadcast_to(qk_sum[:, None, :], (Bt, Hp, Ep))
    neg = jnp.float32(-1e30)
    masked = jnp.where(memb3, qk3, neg)                         # (Bt, Hp, Ep)
    m_h = jnp.max(masked, axis=-1, keepdims=True)               # per-head max
    e3 = jnp.where(memb3, jnp.exp(masked - m_h), 0.0)           # zero off-head
    denom = jnp.sum(e3, axis=-1, keepdims=True)                 # >= 1 always
    sm3 = e3 / denom                                            # exact divide
    # Each lane is non-zero in exactly one head row, so summing over the head
    # axis maps the per-head softmax back to the flat (Bt, Ep) layout.
    attn = jnp.sum(sm3, axis=1) * v_sum                         # (Bt, Ep) f32

    # Feed-forward: Linear -> ReLU -> Linear.
    h = jnp.dot(attn.astype(mm_dtype), w1_ref[...],
                preferred_element_type=jnp.float32) + b1_ref[...]
    h = jnp.maximum(h, 0.0)
    out = jnp.dot(h.astype(mm_dtype), w2_ref[...],
                  preferred_element_type=jnp.float32) + b2_ref[...]
    o_ref[...] = out.astype(o_ref.dtype)


def _round_up(n, m):
    return ((n + m - 1) // m) * m


def _tpu_info():
    try:
        return pltpu.get_tpu_info()
    except Exception:
        return None


def _pick_block_b(batch):
    """256-row tiles for the 256x256 MXUs of v6e/v7x, 128 for v5e-class."""
    target = 128
    info = _tpu_info()
    if info is not None:
        name = str(getattr(info, "chip_version", "")).lower()
        if ("v6" in name) or ("v7" in name):
            target = 256
    return min(target, _round_up(max(batch, 1), 8))


def _vmem_capacity_bytes():
    info = _tpu_info()
    if info is not None:
        cap = getattr(info, "vmem_capacity_bytes", None)
        if cap:
            return int(cap)
    return 64 << 20          # conservative default (v7x per-core VMEM)


def fastformer_pallas(x, params, num_heads, *, block_b=None,
                      matmul_dtype=jnp.bfloat16):
    """Fastformer forward.  x: (B, S, E); params in PyTorch layout."""
    wq, bq, wk, bk, wv, bv, w1, b1, w2, b2 = params
    B, S, E = x.shape
    assert E % num_heads == 0, "embed_dim % num_heads should be 0"
    D = E // num_heads

    # ---- hoist the sequence reduction: the kernel only ever needs sum_s x
    # (exact by linearity of the q/k/v projections).  Plain XLA reduce. ----
    x_sum = jnp.sum(x.astype(jnp.float32), axis=1)              # (B, E)

    # ---- fold the sequence sum through the linear projections (exact) ----
    w_qk = (wq + wk).T.astype(matmul_dtype)     # y = x_sum @ w + b
    b_qk = (S * (bq + bk)).astype(jnp.float32)
    w_v = wv.T.astype(matmul_dtype)
    b_v = (S * bv).astype(jnp.float32)
    w1t = w1.T.astype(matmul_dtype)
    w2t = w2.T.astype(matmul_dtype)
    b1f = b1.astype(jnp.float32)
    b2f = b2.astype(jnp.float32)

    # ---- lane/sublane-dense tiling ----
    Ep = _round_up(E, 128)                       # lane-dense last dim
    if block_b is None:
        block_b = _pick_block_b(B)
    Bt = max(8, _round_up(min(block_b, _round_up(B, 8)), 8))
    Bp = _round_up(B, Bt)
    Hp = -(-Ep // D)                             # heads covering padded width

    def pad_mat(w):
        return jnp.zeros((Ep, Ep), w.dtype).at[:E, :E].set(w)

    def pad_row(b):
        return jnp.zeros((1, Ep), b.dtype).at[0, :E].set(b)

    xs_p = jnp.zeros((Bp, Ep), jnp.float32).at[:B, :E].set(x_sum)

    args = (xs_p,
            pad_mat(w_qk), pad_row(b_qk),
            pad_mat(w_v), pad_row(b_v),
            pad_mat(w1t), pad_row(b1f),
            pad_mat(w2t), pad_row(b2f))

    # Grid-invariant weights/biases never change across grid steps: single
    # buffer them.  Narrow feature check only -- a genuine lowering error must
    # surface instead of silently doubling constant VMEM.
    const_kwargs = ({"pipeline_mode": pl.Buffered(1)}
                    if hasattr(pl, "Buffered") else {})

    def const_spec(shape):
        return pl.BlockSpec(shape, lambda b: (0,) * len(shape), **const_kwargs)

    grid_spec = pltpu.PrefetchScalarGridSpec(
        num_scalar_prefetch=0,
        grid=(Bp // Bt,),
        in_specs=[
            pl.BlockSpec((Bt, Ep), lambda b: (b, 0)),           # reduced rows
            const_spec((Ep, Ep)), const_spec((1, Ep)),          # Wq+Wk, S*(bq+bk)
            const_spec((Ep, Ep)), const_spec((1, Ep)),          # Wv,    S*bv
            const_spec((Ep, Ep)), const_spec((1, Ep)),          # W1,    b1
            const_spec((Ep, Ep)), const_spec((1, Ep)),          # W2,    b2
        ],
        out_specs=pl.BlockSpec((Bt, Ep), lambda b: (b, 0)),
    )

    # Explicit VMEM budget: single-buffered weights + double-buffered row/out
    # tiles + 3-D softmax intermediates, capped at ~3/4 of physical VMEM.
    mm_bytes = jnp.dtype(matmul_dtype).itemsize
    const_bytes = 4 * Ep * Ep * mm_bytes + 4 * 8 * Ep * 4
    io_bytes = 2 * 2 * Bt * Ep * 4
    softmax_bytes = 4 * Bt * max(Hp, 8) * Ep * 4
    needed = const_bytes + io_bytes + softmax_bytes + (8 << 20)
    vmem_limit = int(min(max(needed, 32 << 20),
                         _vmem_capacity_bytes() * 3 // 4))

    kernel = functools.partial(_fastformer_kernel,
                               head_dim=D, num_heads_padded=Hp)

    out_p = pl.pallas_call(
        kernel,
        out_shape=jax.ShapeDtypeStruct((Bp, Ep), jnp.float32),
        grid_spec=grid_spec,
        compiler_params=pltpu.CompilerParams(
            dimension_semantics=("parallel",),
            vmem_limit_bytes=vmem_limit),
    )(*args)

    return out_p[:B, :E]


def fastformer_ref(x, params, num_heads):
    """Pure-JAX reference mirroring the PyTorch forward exactly (f32)."""
    wq, bq, wk, bk, wv, bv, w1, b1, w2, b2 = params
    B, S, E = x.shape
    D = E // num_heads
    q = (x @ wq.T + bq).reshape(B, S, num_heads, D)
    k = (x @ wk.T + bk).reshape(B, S, num_heads, D)
    v = (x @ wv.T + bv).reshape(B, S, num_heads, D)
    qk_sum = jnp.sum(q + k, axis=1)                      # (B, H, D)
    attn = jax.nn.softmax(qk_sum, axis=-1)               # (B, H, D)
    attn = jnp.sum(attn[:, None] * v, axis=1)            # (B, H, D)
    attn = attn.reshape(B, E)
    h = jnp.maximum(attn @ w1.T + b1, 0.0)
    return h @ w2.T + b2


if __name__ == "__main__":
    B, S, E, H = 2, 8, 32, 4
    key = jax.random.PRNGKey(0)
    keys = jax.random.split(key, 11)

    x = jax.random.normal(keys[0], (B, S, E), dtype=jnp.float32)

    def lin(kw, kb, shape):
        return (0.1 * jax.random.normal(kw, shape, dtype=jnp.float32),
                0.1 * jax.random.normal(kb, (shape[0],), dtype=jnp.float32))

    wq, bq = lin(keys[1], keys[2], (E, E))
    wk, bk = lin(keys[3], keys[4], (E, E))
    wv, bv = lin(keys[5], keys[6], (E, E))
    w1, b1 = lin(keys[7], keys[8], (E, E))
    w2, b2 = lin(keys[9], keys[10], (E, E))
    params = (wq, bq, wk, bk, wv, bv, w1, b1, w2, b2)

    ref = fastformer_ref(x, params, H)

    # f32 matmul operands (matches the f32 PyTorch module closely).
    out_f32 = jax.block_until_ready(
        fastformer_pallas(x, params, H, matmul_dtype=jnp.float32))
    assert out_f32.shape == (B, E)
    assert jnp.allclose(out_f32, ref, atol=1e-3, rtol=1e-3), (
        f"f32 max abs err {jnp.max(jnp.abs(out_f32 - ref))}")

    # Default bf16 matmul operands (native MXU path on v5e/v6e/v7x);
    # elementwise math (softmax / relu / bias adds) stays f32.
    out_bf16 = jax.block_until_ready(fastformer_pallas(x, params, H))
    assert out_bf16.shape == (B, E)
    assert jnp.allclose(out_bf16, ref, atol=5e-2, rtol=5e-2), (
        f"bf16 max abs err {jnp.max(jnp.abs(out_bf16 - ref))}")

    print("KERNEL_OK")
</pallas_src>

<mosaic_0001>
module attributes {stable_mosaic.version = 11 : i64} {
  func.func @_fastformer_kernel(%arg0: i32, %arg1: memref<8x128xf32, #tpu.memory_space<vmem>>, %arg2: memref<128x128xf32, #tpu.memory_space<vmem>>, %arg3: memref<1x128xf32, #tpu.memory_space<vmem>>, %arg4: memref<128x128xf32, #tpu.memory_space<vmem>>, %arg5: memref<1x128xf32, #tpu.memory_space<vmem>>, %arg6: memref<128x128xf32, #tpu.memory_space<vmem>>, %arg7: memref<1x128xf32, #tpu.memory_space<vmem>>, %arg8: memref<128x128xf32, #tpu.memory_space<vmem>>, %arg9: memref<1x128xf32, #tpu.memory_space<vmem>>, %arg10: memref<8x128xf32, #tpu.memory_space<vmem>>) attributes {dimension_semantics = [#tpu.dimension_semantics<parallel>], iteration_bounds = array<i64: 1>, scalar_prefetch = 0 : i64, scratch_operands = 0 : i64, tpu.core_type = #tpu.core_type<tc>, window_params = [{transform_indices = @transform_0, window_bounds = array<i64: 8, 128>}, {pipeline_mode = #tpu.pipeline_mode<synchronous>, transform_indices = @transform_1, window_bounds = array<i64: 128, 128>}, {pipeline_mode = #tpu.pipeline_mode<synchronous>, transform_indices = @transform_2, window_bounds = array<i64: 1, 128>}, {pipeline_mode = #tpu.pipeline_mode<synchronous>, transform_indices = @transform_3, window_bounds = array<i64: 128, 128>}, {pipeline_mode = #tpu.pipeline_mode<synchronous>, transform_indices = @transform_4, window_bounds = array<i64: 1, 128>}, {pipeline_mode = #tpu.pipeline_mode<synchronous>, transform_indices = @transform_5, window_bounds = array<i64: 128, 128>}, {pipeline_mode = #tpu.pipeline_mode<synchronous>, transform_indices = @transform_6, window_bounds = array<i64: 1, 128>}, {pipeline_mode = #tpu.pipeline_mode<synchronous>, transform_indices = @transform_7, window_bounds = array<i64: 128, 128>}, {pipeline_mode = #tpu.pipeline_mode<synchronous>, transform_indices = @transform_8, window_bounds = array<i64: 1, 128>}, {transform_indices = @transform_9, window_bounds = array<i64: 8, 128>}]} {
    %c0 = arith.constant 0 : index
    %c0_0 = arith.constant 0 : index
    %0 = vector.load %arg1[%c0, %c0_0] : memref<8x128xf32, #tpu.memory_space<vmem>>, vector<8x128xf32>
    %c0_1 = arith.constant 0 : index
    %c0_2 = arith.constant 0 : index
    %1 = vector.load %arg2[%c0_1, %c0_2] : memref<128x128xf32, #tpu.memory_space<vmem>>, vector<128x128xf32>
    %cst = arith.constant dense<0.000000e+00> : vector<8x128xf32>
    %2 = tpu.matmul %0, %1, %cst {dimension_numbers = #tpu.dot_dimension_numbers<[1], [0], [0], [1], [0, 0, 1, 1], [], []>} : vector<8x128xf32>, vector<128x128xf32>, vector<8x128xf32> -> vector<8x128xf32>
    %c0_3 = arith.constant 0 : index
    %c0_4 = arith.constant 0 : index
    %3 = vector.load %arg3[%c0_3, %c0_4] : memref<1x128xf32, #tpu.memory_space<vmem>>, vector<1x128xf32>
    %4 = vector.broadcast %3 : vector<1x128xf32> to vector<8x128xf32>
    %5 = arith.addf %2, %4 : vector<8x128xf32>
    %c0_5 = arith.constant 0 : index
    %c0_6 = arith.constant 0 : index
    %6 = vector.load %arg4[%c0_5, %c0_6] : memref<128x128xf32, #tpu.memory_space<vmem>>, vector<128x128xf32>
    %cst_7 = arith.constant dense<0.000000e+00> : vector<8x128xf32>
    %7 = tpu.matmul %0, %6, %cst_7 {dimension_numbers = #tpu.dot_dimension_numbers<[1], [0], [0], [1], [0, 0, 1, 1], [], []>} : vector<8x128xf32>, vector<128x128xf32>, vector<8x128xf32> -> vector<8x128xf32>
    %c0_8 = arith.constant 0 : index
    %c0_9 = arith.constant 0 : index
    %8 = vector.load %arg5[%c0_8, %c0_9] : memref<1x128xf32, #tpu.memory_space<vmem>>, vector<1x128xf32>
    %9 = vector.broadcast %8 : vector<1x128xf32> to vector<8x128xf32>
    %10 = arith.addf %7, %9 : vector<8x128xf32>
    %11 = tpu.iota {dimensions = array<i32: 0>} : vector<16x128xi32>
    %12 = tpu.iota {dimensions = array<i32: 1>} : vector<16x128xi32>
    %c8_i32 = arith.constant 8 : i32
    %13 = vector.broadcast %c8_i32 : i32 to vector<16x128xi32>
    %14 = arith.muli %11, %13 : vector<16x128xi32>
    %15 = arith.cmpi sge, %12, %14 : vector<16x128xi32>
    %c8_i32_10 = arith.constant 8 : i32
    %16 = vector.broadcast %c8_i32_10 : i32 to vector<16x128xi32>
    %17 = arith.addi %14, %16 : vector<16x128xi32>
    %18 = arith.cmpi slt, %12, %17 : vector<16x128xi32>
    %19 = arith.andi %15, %18 : vector<16x128xi1>
    %20 = vector.shape_cast %19 : vector<16x128xi1> to vector<1x16x128xi1>
    %21 = vector.shape_cast %20 : vector<1x16x128xi1> to vector<1x16x128xi1>
    %22 = vector.broadcast %21 : vector<1x16x128xi1> to vector<8x16x128xi1>
    %23 = vector.shape_cast %5 : vector<8x128xf32> to vector<8x1x128xf32>
    %24 = vector.shape_cast %23 : vector<8x1x128xf32> to vector<8x1x128xf32>
    %25 = vector.broadcast %24 : vector<8x1x128xf32> to vector<8x16x128xf32>
    %cst_11 = arith.constant -1.000000e+30 : f32
    %26 = vector.broadcast %cst_11 : f32 to vector<8x16x128xf32>
    %27 = arith.select %22, %25, %26 : vector<8x16x128xi1>, vector<8x16x128xf32>
    %cst_12 = arith.constant dense<0xFF800000> : vector<8x16xf32>
    %28 = vector.multi_reduction <maximumf>, %27, %cst_12 [2] : vector<8x16x128xf32> to vector<8x16xf32>
    %29 = vector.shape_cast %28 : vector<8x16xf32> to vector<8x16x1xf32>
    %30 = vector.broadcast %29 : vector<8x16x1xf32> to vector<8x16x128xf32>
    %31 = arith.subf %27, %30 : vector<8x16x128xf32>
    %32 = math.exp %31 : vector<8x16x128xf32>
    %cst_13 = arith.constant 0.000000e+00 : f32
    %33 = vector.broadcast %cst_13 : f32 to vector<8x16x128xf32>
    %34 = arith.select %22, %32, %33 : vector<8x16x128xi1>, vector<8x16x128xf32>
    %cst_14 = arith.constant dense<0.000000e+00> : vector<8x16xf32>
    %35 = vector.multi_reduction <add>, %34, %cst_14 [2] : vector<8x16x128xf32> to vector<8x16xf32>
    %36 = vector.shape_cast %35 : vector<8x16xf32> to vector<8x16x1xf32>
    %37 = vector.broadcast %36 : vector<8x16x1xf32> to vector<8x16x128xf32>
    %38 = arith.divf %34, %37 : vector<8x16x128xf32>
    %cst_15 = arith.constant dense<0.000000e+00> : vector<8x128xf32>
    %39 = vector.multi_reduction <add>, %38, %cst_15 [1] : vector<8x16x128xf32> to vector<8x128xf32>
    %40 = arith.mulf %39, %10 : vector<8x128xf32>
    %c0_16 = arith.constant 0 : index
    %c0_17 = arith.constant 0 : index
    %41 = vector.load %arg6[%c0_16, %c0_17] : memref<128x128xf32, #tpu.memory_space<vmem>>, vector<128x128xf32>
    %cst_18 = arith.constant dense<0.000000e+00> : vector<8x128xf32>
    %42 = tpu.matmul %40, %41, %cst_18 {dimension_numbers = #tpu.dot_dimension_numbers<[1], [0], [0], [1], [0, 0, 1, 1], [], []>} : vector<8x128xf32>, vector<128x128xf32>, vector<8x128xf32> -> vector<8x128xf32>
    %c0_19 = arith.constant 0 : index
    %c0_20 = arith.constant 0 : index
    %43 = vector.load %arg7[%c0_19, %c0_20] : memref<1x128xf32, #tpu.memory_space<vmem>>, vector<1x128xf32>
    %44 = vector.broadcast %43 : vector<1x128xf32> to vector<8x128xf32>
    %45 = arith.addf %42, %44 : vector<8x128xf32>
    %cst_21 = arith.constant 0.000000e+00 : f32
    %46 = vector.broadcast %cst_21 : f32 to vector<8x128xf32>
    %47 = arith.maximumf %45, %46 : vector<8x128xf32>
    %c0_22 = arith.constant 0 : index
    %c0_23 = arith.constant 0 : index
    %48 = vector.load %arg8[%c0_22, %c0_23] : memref<128x128xf32, #tpu.memory_space<vmem>>, vector<128x128xf32>
    %cst_24 = arith.constant dense<0.000000e+00> : vector<8x128xf32>
    %49 = tpu.matmul %47, %48, %cst_24 {dimension_numbers = #tpu.dot_dimension_numbers<[1], [0], [0], [1], [0, 0, 1, 1], [], []>} : vector<8x128xf32>, vector<128x128xf32>, vector<8x128xf32> -> vector<8x128xf32>
    %c0_25 = arith.constant 0 : index
    %c0_26 = arith.constant 0 : index
    %50 = vector.load %arg9[%c0_25, %c0_26] : memref<1x128xf32, #tpu.memory_space<vmem>>, vector<1x128xf32>
    %51 = vector.broadcast %50 : vector<1x128xf32> to vector<8x128xf32>
    %52 = arith.addf %49, %51 : vector<8x128xf32>
    %c0_27 = arith.constant 0 : index
    %c0_28 = arith.constant 0 : index
    %53 = vector.load %arg10[%c0_27, %c0_28] : memref<8x128xf32, #tpu.memory_space<vmem>>, vector<8x128xf32>
    tpu.vector_store %arg10[%c0_27, %c0_28], %52 {strides = array<i32>} : memref<8x128xf32, #tpu.memory_space<vmem>>, vector<8x128xf32>,
    return
  }
  func.func @transform_0(%arg0: i32) -> (i32, i32) {
    %c0_i32 = arith.constant 0 : i32
    %c0_i32_0 = arith.constant 0 : i32
    return %arg0, %c0_i32 : i32, i32
  }
  func.func @transform_1(%arg0: i32) -> (i32, i32) {
    %c0_i32 = arith.constant 0 : i32
    %c0_i32_0 = arith.constant 0 : i32
    %c0_i32_1 = arith.constant 0 : i32
    return %c0_i32, %c0_i32_0 : i32, i32
  }
  func.func @transform_2(%arg0: i32) -> (i32, i32) {
    %c0_i32 = arith.constant 0 : i32
    %c0_i32_0 = arith.constant 0 : i32
    %c0_i32_1 = arith.constant 0 : i32
    return %c0_i32, %c0_i32_0 : i32, i32
  }
  func.func @transform_3(%arg0: i32) -> (i32, i32) {
    %c0_i32 = arith.constant 0 : i32
    %c0_i32_0 = arith.constant 0 : i32
    %c0_i32_1 = arith.constant 0 : i32
    return %c0_i32, %c0_i32_0 : i32, i32
  }
  func.func @transform_4(%arg0: i32) -> (i32, i32) {
    %c0_i32 = arith.constant 0 : i32
    %c0_i32_0 = arith.constant 0 : i32
    %c0_i32_1 = arith.constant 0 : i32
    return %c0_i32, %c0_i32_0 : i32, i32
  }
  func.func @transform_5(%arg0: i32) -> (i32, i32) {
    %c0_i32 = arith.constant 0 : i32
    %c0_i32_0 = arith.constant 0 : i32
    %c0_i32_1 = arith.constant 0 : i32
    return %c0_i32, %c0_i32_0 : i32, i32
  }
  func.func @transform_6(%arg0: i32) -> (i32, i32) {
    %c0_i32 = arith.constant 0 : i32
    %c0_i32_0 = arith.constant 0 : i32
    %c0_i32_1 = arith.constant 0 : i32
    return %c0_i32, %c0_i32_0 : i32, i32
  }
  func.func @transform_7(%arg0: i32) -> (i32, i32) {
    %c0_i32 = arith.constant 0 : i32
    %c0_i32_0 = arith.constant 0 : i32
    %c0_i32_1 = arith.constant 0 : i32
    return %c0_i32, %c0_i32_0 : i32, i32
  }
  func.func @transform_8(%arg0: i32) -> (i32, i32) {
    %c0_i32 = arith.constant 0 : i32
    %c0_i32_0 = arith.constant 0 : i32
    %c0_i32_1 = arith.constant 0 : i32
    return %c0_i32, %c0_i32_0 : i32, i32
  }
  func.func @transform_9(%arg0: i32) -> (i32, i32) {
    %c0_i32 = arith.constant 0 : i32
    %c0_i32_0 = arith.constant 0 : i32
    return %arg0, %c0_i32 : i32, i32
  }
}

</mosaic_0001>

<bundles_post_ra>
// kernel: tpu_custom_call.1
= control target key start
LH: loop header
LB: loop body
LE: loop exit
PB: predicated region body
PF: predicated region fallthrough
CT: control target
= control target key end

     0   :  { %14 = vsyncpa [#allocation3], 0  ;;  %s1775_s0 = inlined_call_operand.hbm [shape: f32[8,128], index: 0, kind: input, shape index: {}]   ;;  %s1776_s1 = inlined_call_operand.hbm [shape: f32[128,128], index: 1, kind: input, shape index: {}]   ;;  %s1777_s2 = inlined_call_operand.vmem [shape: f32[1,128], index: 2, kind: input, shape index: {}]   ;;  %s1778_s3 = inlined_call_operand.hbm [shape: f32[128,128], index: 3, kind: input, shape index: {}]   ;;  %s1779_s4 = inlined_call_operand.vmem [shape: f32[1,128], index: 4, kind: input, shape index: {}]   ;;  %s1780_s5 = inlined_call_operand.hbm [shape: f32[128,128], index: 5, kind: input, shape index: {}]   ;;  %s1781_s6 = inlined_call_operand.vmem [shape: f32[1,128], index: 6, kind: input, shape index: {}]   ;;  %s1782_s7 = inlined_call_operand.hbm [shape: f32[128,128], index: 7, kind: input, shape index: {}]   ;;  %s1783_s8 = inlined_call_operand.vmem [shape: f32[1,128], index: 8, kind: input, shape index: {}]   ;;  %s1784_s9 = inlined_call_operand.hbm [shape: f32[8,128], index: 9, kind: output, shape index: {}]  }
   0x1   :  { %15 = vsyncpa [#allocation6], 0 }
   0x2   :  { %16 = vsyncpa [#allocation9], 0 }
   0x3   :  { %17 = vsyncpa [#allocation4], 0  ;;  %s1410_s30 = smov [#allocation5]   ;;  %s1270_s13 = scalar_lea.hbm %s1776_s1, 2048 }
   0x4   :  { %s33_s10 = sshll.u32 %s1410_s30, 4  ;;  %p1271_p0 = scmp.ne.s32.totalorder %s1776_s1, %s1270_s13  ;;  %s34_s10 = int_to_ptr.vmem [resolvable:$true] %s33_s10 }
   0x5   :  { %p1274_p1 = scmp.lt.u32.totalorder %s1270_s13, %s1776_s1 }
   0x7   :  { %p1276_p2 = pnand %p1274_p1, %p1271_p0 }
   0x9   :  { %1279 = shalt.err (!%p1276_p2)
}
   0xa   :  { %s1280_s18 = scalar_lea.vmem %s34_s10, 2048  ;;  %p1285_p4 = scmp.lt.s32.totalorder %s34_s10, %s34_s10 }
   0xb   :  { %p1281_p3 = scmp.ne.s32.totalorder %s34_s10, %s1280_s18  ;;  %p1286_p5 = scmp.lt.s32.totalorder %s1280_s18, %s1280_s18 }
   0xd   :  { %p1287_p6 = por %p1286_p5, %p1285_p4 }
   0xf   :  { %p1288_p7 = pnand %p1287_p6, %p1281_p3 }
  0x11   :  { %1291 = shalt.err (!%p1288_p7)
}
  0x12   :  { %s1411_s19 = smov 128   ;;  %s1412_s20 = smov 8  }
  0x13   :  { %39 = dma.hbm_to_vmem [thread:$0]  %s1776_s1, 2048, %s34_s10, [#allocation6], %s1411_s19, %s1411_s19, %s1412_s20  }
  0x14   :  { %s1413_s23 = smov [#allocation8]   ;;  %s1414_s25 = smov [#allocation2]  }
  0x15   :  { %s61_s24 = sshll.u32 %s1413_s23, 4  ;;  %s24_s26 = sshll.u32 %s1414_s25, 4  ;;  %s62_s24 = int_to_ptr.vmem [resolvable:$true] %s61_s24  ;;  %s25_s26 = int_to_ptr.vmem [resolvable:$true] %s24_s26 }
  0x16   :  { %s1292_s29 = scalar_lea.hbm %s1780_s5, 2048 }
  0x17   :  { %p1293_p8 = scmp.ne.s32.totalorder %s1780_s5, %s1292_s29  ;;  %p1296_p9 = scmp.lt.u32.totalorder %s1292_s29, %s1780_s5 }
  0x19   :  { %p1298_p10 = pnand %p1296_p9, %p1293_p8 }
  0x1b   :  { %1301 = shalt.err (!%p1298_p10)
}
  0x1c   :  { %s1302_s1 = scalar_lea.vmem %s62_s24, 2048  ;;  %p1307_p12 = scmp.lt.s32.totalorder %s62_s24, %s62_s24 }
  0x1d   :  { %p1303_p11 = scmp.ne.s32.totalorder %s62_s24, %s1302_s1  ;;  %p1308_p13 = scmp.lt.s32.totalorder %s1302_s1, %s1302_s1 }
  0x1f   :  { %p1309_p0 = por %p1308_p13, %p1307_p12 }
  0x21   :  { %p1310_p1 = pnand %p1309_p0, %p1303_p11 }
  0x23   :  { %1313 = shalt.err (!%p1310_p1)
}
  0x24   :  { %67 = dma.hbm_to_vmem [thread:$0]  %s1780_s5, 2048, %s62_s24, [#allocation9], %s1411_s19, %s1411_s19, %s1412_s20  }
  0x25   :  { %s1314_s17 = scalar_lea.hbm %s1775_s0, 128 }
  0x26   :  { %p1315_p2 = scmp.ne.s32.totalorder %s1775_s0, %s1314_s17  ;;  %p1318_p3 = scmp.lt.u32.totalorder %s1314_s17, %s1775_s0 }
  0x28   :  { %p1320_p4 = pnand %p1318_p3, %p1315_p2 }
  0x2a   :  { %1323 = shalt.err (!%p1320_p4)
}
  0x2b   :  { %s1324_s25 = scalar_lea.vmem %s25_s26, 128  ;;  %p1329_p6 = scmp.lt.s32.totalorder %s25_s26, %s25_s26 }
  0x2c   :  { %p1325_p5 = scmp.ne.s32.totalorder %s25_s26, %s1324_s25  ;;  %p1330_p7 = scmp.lt.s32.totalorder %s1324_s25, %s1324_s25 }
  0x2e   :  { %p1331_p8 = por %p1330_p7, %p1329_p6 }
  0x30   :  { %p1332_p9 = pnand %p1331_p8, %p1325_p5 }
  0x32   :  { %1335 = shalt.err (!%p1332_p9)
}
  0x33   :  { %27 = dma.hbm_to_vmem [thread:$0]  %s1775_s0, 128, %s25_s26, [#allocation3]  }
  0x34   :  { %s1415_s27 = smov [#allocation7]   ;;  %s1416_s29 = smov [#allocation10]  }
  0x35   :  { %s47_s28 = sshll.u32 %s1415_s27, 4  ;;  %s75_s30 = sshll.u32 %s1416_s29, 4  ;;  %s48_s28 = int_to_ptr.vmem [resolvable:$true] %s47_s28  ;;  %s76_s30 = int_to_ptr.vmem [resolvable:$true] %s75_s30 }
  0x36   :  { %s1336_s13 = scalar_lea.hbm %s1778_s3, 2048 }
  0x37   :  { %p1337_p10 = scmp.ne.s32.totalorder %s1778_s3, %s1336_s13  ;;  %p1340_p11 = scmp.lt.u32.totalorder %s1336_s13, %s1778_s3 }
  0x39   :  { %p1342_p12 = pnand %p1340_p11, %p1337_p10 }
  0x3b   :  { %1345 = shalt.err (!%p1342_p12)
}
  0x3c   :  { %s1346_s0 = scalar_lea.vmem %s48_s28, 2048  ;;  %p1351_p0 = scmp.lt.s32.totalorder %s48_s28, %s48_s28 }
  0x3d   :  { %p1347_p13 = scmp.ne.s32.totalorder %s48_s28, %s1346_s0  ;;  %p1352_p1 = scmp.lt.s32.totalorder %s1346_s0, %s1346_s0 }
  0x3f   :  { %p1353_p2 = por %p1352_p1, %p1351_p0 }
  0x41   :  { %p1354_p3 = pnand %p1353_p2, %p1347_p13 }
  0x43   :  { %1357 = shalt.err (!%p1354_p3)
}
  0x44   :  { %53 = dma.hbm_to_vmem [thread:$0]  %s1778_s3, 2048, %s48_s28, [#allocation6], %s1411_s19, %s1411_s19, %s1412_s20  }
  0x45   :  { %s1358_s21 = scalar_lea.hbm %s1782_s7, 2048 }
  0x46   :  { %p1359_p4 = scmp.ne.s32.totalorder %s1782_s7, %s1358_s21  ;;  %p1362_p5 = scmp.lt.u32.totalorder %s1358_s21, %s1782_s7 }
  0x48   :  { %p1364_p6 = pnand %p1362_p5, %p1359_p4 }
  0x4a   :  { %1367 = shalt.err (!%p1364_p6)
}
  0x4b   :  { %s1368_s24 = scalar_lea.vmem %s76_s30, 2048  ;;  %p1373_p8 = scmp.lt.s32.totalorder %s76_s30, %s76_s30 }
  0x4c   :  { %p1369_p7 = scmp.ne.s32.totalorder %s76_s30, %s1368_s24  ;;  %p1374_p9 = scmp.lt.s32.totalorder %s1368_s24, %s1368_s24 }
  0x4e   :  { %p1375_p10 = por %p1374_p9, %p1373_p8 }
  0x50   :  { %p1376_p11 = pnand %p1375_p10, %p1369_p7 }
  0x52   :  { %1379 = shalt.err (!%p1376_p11)
}
  0x53   :  { %81 = dma.hbm_to_vmem [thread:$0]  %s1782_s7, 2048, %s76_s30, [#allocation9], %s1411_s19, %s1411_s19, %s1412_s20  }
  0x54   :  { %1402 = dma.done.wait [#allocation3], 128  }
  0x55   :  { %1403 = vsyncadd [#allocation3], 4294967168 }
  0x56   :  { %1404 = dma.done.wait [#allocation6], 4096  }
  0x57   :  { %1405 = vsyncadd [#allocation6], 4294963200 }
  0x58   :  { %1406 = dma.done.wait [#allocation9], 4096  }
  0x59   :  { %1407 = vsyncadd [#allocation9], 4294963200  ;;  %v1417_v0 = vmov 0.0|0.0   ;;  %vm1418_vm0 = vmmov 0   ;;  %v1419_v1 = vmov 0.0   ;;  %v100_v2 = vld [vmem:[#allocation5] sm:$0xff]  ;;  %v286_v51 = vlaneseq }
  0x5a   :  { %1098 = vmatprep.subr.bf16.mxu0 %v1417_v0  ;;  %990 = vmatprep.mubr.msk.f32.mxu0 %vm1418_vm0, %v1419_v1  ;;  %v101_v3 = vld [vmem:[#allocation5 + $0x8] sm:$0xff]  ;;  %v102_v4 = vld [vmem:[#allocation5 + $0x10] sm:$0xff]  ;;  %v103_v6 = vld [vmem:[#allocation5 + $0x18] sm:$0xff]  ;;  %v1420_v54 = vmov 1966171168   ;;  %vm683_vm7 = vcmask 1041409  }
  0x5b   :  { %1122 = vmatprep.subr.bf16.mxu1 %v1417_v0  ;;  %1025 = vmatprep.mubr.msk.f32.mxu1 %vm1418_vm0, %v1419_v1  ;;  %v1099_v5 = vpack.c.bf16 %v101_v3, %v100_v2  ;;  %v1102_v7 = vpack.c.bf16 %v103_v6, %v102_v4  ;;  %v104_v8 = vld [vmem:[#allocation5 + $0x20] sm:$0xff]  ;;  %v105_v9 = vld [vmem:[#allocation5 + $0x28] sm:$0xff]  ;;  %v106_v11 = vld [vmem:[#allocation5 + $0x30] sm:$0xff]  ;;  %v287_v52 = vshrl.u32 %v286_v51, 7  ;;  %v308_v55 = vunpack.c.l.s4 %v1420_v54  ;;  %s1421_s11 = smov [#allocation11]  }
  0x5c   :  { %v1105_v10 = vpack.c.bf16 %v105_v9, %v104_v8  ;;  %v107_v12 = vld [vmem:[#allocation5 + $0x38] sm:$0xff]  ;;  %v108_v14 = vld [vmem:[#allocation5 + $0x40] sm:$0xff]  ;;  %v109_v15 = vld [vmem:[#allocation5 + $0x48] sm:$0xff]  ;;  %v290_v60 = vand.u32 127, %v286_v51  ;;  %vm686_vm8 = vcmask 1042434   ;;  %vm689_vm9 = vcmask 1043459  }
  0x5d   :  { %1100 = vmatpush3.bf16.msra.mxu0 %v1099_v5  ;;  %v1108_v13 = vpack.c.bf16 %v107_v12, %v106_v11  ;;  %v1111_v16 = vpack.c.bf16 %v109_v15, %v108_v14  ;;  %v110_v17 = vld [vmem:[#allocation5 + $0x50] sm:$0xff]  ;;  %v111_v18 = vld [vmem:[#allocation5 + $0x58] sm:$0xff]  ;;  %v112_v20 = vld [vmem:[#allocation5 + $0x60] sm:$0xff]  ;;  %v288_v53 = vadd.s32 8, %v287_v52  ;;  %v291_v56 = vmul.u32 8, %v287_v52  ;;  %s875_s12 = sshll.u32 %s1421_s11, 4  ;;  %s876_s12 = int_to_ptr.vmem [resolvable:$true] %s875_s12 }
  0x5e   :  { %1101 = vmatprep.subr.bf16.mxu0 %v1417_v0  ;;  %v1114_v19 = vpack.c.bf16 %v111_v18, %v110_v17  ;;  %v113_v21 = vld [vmem:[#allocation5 + $0x68] sm:$0xff]  ;;  %v114_v23 = vld [vmem:[#allocation5 + $0x70] sm:$0xff]  ;;  %v115_v24 = vld [vmem:[#allocation5 + $0x78] sm:$0xff]  ;;  %v309_v58 = vunpack.c.0.s8 %v308_v55  ;;  %v357_v5 = vsub.s32 0, %v287_v52  ;;  %vm692_vm10 = vcmask 1044484   ;;  %s1380_s13 = scalar_lea.vmem %s876_s12, 128  ;;  %p1385_p13 = scmp.lt.s32.totalorder %s876_s12, %s876_s12 }
  0x5f   :  { %v1117_v22 = vpack.c.bf16 %v113_v21, %v112_v20  ;;  %v1120_v25 = vpack.c.bf16 %v115_v24, %v114_v23  ;;  %v99_v26 = vld [vmem:[#allocation2] sm:$0xff]  ;;  %v193_v27 = vld [vmem:[#allocation7] sm:$0xff]  ;;  %v194_v28 = vld [vmem:[#allocation7 + $0x8] sm:$0xff]  ;;  %v292_v57 = vmul.u32 8, %v288_v53  ;;  %v295_v61 = vadd.s32 8, %v291_v56  ;;  %p1381_p12 = scmp.ne.s32.totalorder %s876_s12, %s1380_s13  ;;  %p1386_p0 = scmp.lt.s32.totalorder %s1380_s13, %s1380_s13 }
  0x60   :  { %v195_v29 = vld [vmem:[#allocation7 + $0x10] sm:$0xff]  ;;  %v1123_v30 = vpack.c.bf16 %v194_v28, %v193_v27  ;;  %v196_v31 = vld [vmem:[#allocation7 + $0x18] sm:$0xff]  ;;  %v197_v33 = vld [vmem:[#allocation7 + $0x20] sm:$0xff]  ;;  %v312_v63 = vsub.s32 %v309_v58, %v287_v52  ;;  %vm293_vm1 = vcmp.ge.s32.totalorder %v290_v60, %v291_v56  ;;  %vm695_vm11 = vcmask 1045509  }
  0x61   :  { %1103 = vmatpush3.bf16.msra.mxu0 %v1102_v7  ;;  %v1126_v32 = vpack.c.bf16 %v196_v31, %v195_v29  ;;  %v198_v34 = vld [vmem:[#allocation7 + $0x28] sm:$0xff]  ;;  %v199_v36 = vld [vmem:[#allocation7 + $0x30] sm:$0xff]  ;;  %v200_v37 = vld [vmem:[#allocation7 + $0x38] sm:$0xff]  ;;  %v296_v62 = vadd.s32 8, %v292_v57  ;;  %vm297_vm2 = vcmp.lt.s32.totalorder %v290_v60, %v295_v61  ;;  %vm294_vm3 = vcmp.ge.s32.totalorder %v290_v60, %v292_v57  ;;  %p1387_p1 = por %p1386_p0, %p1385_p13 }
  0x62   :  { %1104 = vmatprep.subr.bf16.mxu0 %v1417_v0  ;;  %1124 = vmatpush3.bf16.msra.mxu1 %v1123_v30  ;;  %v1129_v35 = vpack.c.bf16 %v198_v34, %v197_v33  ;;  %v1132_v38 = vpack.c.bf16 %v200_v37, %v199_v36  ;;  %v201_v39 = vld [vmem:[#allocation7 + $0x40] sm:$0xff]  ;;  %v202_v40 = vld [vmem:[#allocation7 + $0x48] sm:$0xff]  ;;  %v203_v42 = vld [vmem:[#allocation7 + $0x50] sm:$0xff]  ;;  %vm698_vm12 = vcmask 1046534   ;;  %vm701_vm13 = vcmask 1047559  }
  0x63   :  { %1125 = vmatprep.subr.bf16.mxu1 %v1417_v0  ;;  %v1135_v41 = vpack.c.bf16 %v202_v40, %v201_v39  ;;  %v204_v43 = vld [vmem:[#allocation7 + $0x58] sm:$0xff]  ;;  %v205_v45 = vld [vmem:[#allocation7 + $0x60] sm:$0xff]  ;;  %v206_v46 = vld [vmem:[#allocation7 + $0x68] sm:$0xff]  ;;  %vm298_vm4 = vcmp.lt.s32.totalorder %v290_v60, %v296_v62  ;;  %p1388_p2 = pnand %p1387_p1, %p1381_p12 }
  0x64   :  { %v1138_v44 = vpack.c.bf16 %v204_v43, %v203_v42  ;;  %v1141_v47 = vpack.c.bf16 %v206_v46, %v205_v45  ;;  %v207_v48 = vld [vmem:[#allocation7 + $0x70] sm:$0xff]  ;;  %v208_v49 = vld [vmem:[#allocation7 + $0x78] sm:$0xff]  ;;  %vm1573_vm5 = vmand %vm293_vm1, %vm297_vm2 }
  0x65   :  { %1106 = vmatpush3.bf16.msra.mxu0 %v1105_v10  ;;  %v1144_v50 = vpack.c.bf16 %v208_v49, %v207_v48  ;;  %v886_v59 = vld [vmem:[%s1777_s2] ss:$0 sm:$0xff]  ;;  %vm1577_vm6 = vmand %vm294_vm3, %vm298_vm4  ;;  %v653_v7 = vld [vmem:[#allocation8 + $0x10] sm:$0xff] }
  0x66   :  { %1107 = vmatprep.subr.bf16.mxu0 %v1417_v0  ;;  %1127 = vmatpush3.bf16.msra.mxu1 %v1126_v32  ;;  %v655_v10 = vld [vmem:[#allocation8 + $0x20] sm:$0xff] }
  0x67   :  { %1128 = vmatprep.subr.bf16.mxu1 %v1417_v0 }
  0x69   :  { %1109 = vmatpush3.bf16.msra.mxu0 %v1108_v13 }
  0x6a   :  { %1110 = vmatprep.subr.bf16.mxu0 %v1417_v0  ;;  %1130 = vmatpush3.bf16.msra.mxu1 %v1129_v35 }
  0x6b   :  { %1131 = vmatprep.subr.bf16.mxu1 %v1417_v0 }
  0x6d   :  { %1112 = vmatpush3.bf16.msra.mxu0 %v1111_v16 }
  0x6e   :  { %1113 = vmatprep.subr.bf16.mxu0 %v1417_v0  ;;  %1133 = vmatpush3.bf16.msra.mxu1 %v1132_v38 }
  0x6f   :  { %1134 = vmatprep.subr.bf16.mxu1 %v1417_v0 }
  0x71   :  { %1115 = vmatpush3.bf16.msra.mxu0 %v1114_v19 }
  0x72   :  { %1116 = vmatprep.subr.bf16.mxu0 %v1417_v0  ;;  %1136 = vmatpush3.bf16.msra.mxu1 %v1135_v41 }
  0x73   :  { %1137 = vmatprep.subr.bf16.mxu1 %v1417_v0 }
  0x75   :  { %1118 = vmatpush3.bf16.msra.mxu0 %v1117_v22 }
  0x76   :  { %1119 = vmatprep.subr.bf16.mxu0 %v1417_v0  ;;  %1139 = vmatpush3.bf16.msra.mxu1 %v1138_v44 }
  0x77   :  { %1140 = vmatprep.subr.bf16.mxu1 %v1417_v0 }
  0x79   :  { %1121 = vmatpush3.bf16.msra.mxu0 %v1120_v25 }
  0x7a   :  { %1146 = vmatprep.subr.bf16.mxu0 %v1417_v0  ;;  %1142 = vmatpush3.bf16.msra.mxu1 %v1141_v47 }
  0x7b   :  { %1143 = vmatprep.subr.bf16.mxu1 %v1417_v0 }
  0x7c   :  { %991 = vmatmul.mubr.f32.vlgmr.msra.gmra.mrb[0].mxu0 %v99_v26 }
  0x7d   :  { %1060 = vmatprep.mubr.msk.f32.mxu0 %vm1418_vm0, %v1419_v1 }
  0x7e   :  { %1145 = vmatpush3.bf16.msra.mxu1 %v1144_v50 }
  0x7f   :  { %1170 = vmatprep.subr.bf16.mxu1 %v1417_v0 }
  0x81   :  { %1026 = vmatmul.mubr.f32.vlgmr.msra.gmra.mrb[0].mxu1 %v99_v26 }
  0x82   :  { %1095 = vmatprep.mubr.msk.f32.mxu1 %vm1418_vm0, %v1419_v1 }
 0x14f   :  { %v189_v2 = vpop.f32.mrb[0].mxu0 }
 0x150   :  { %v190_v3 = vadd.f32 %v886_v59, %v189_v2  ;;  %v992_v4 = vpop.f32.mrb[1].mxu0 }
 0x152   :  { %v313_v1 = vrot.slane %v190_v3, %v312_v63  ;;  %v306_v6 = vcombine.high %v190_v3, %v190_v3 }
 0x154   :  { %v321_v8 = vcombine.high %v313_v1, %v313_v1  ;;  %v329_v9 = vrot.slane %v313_v1, %v312_v63  ;;  %v320_v14 = vrot.slane %v306_v6, %v312_v63 }
 0x156   :  { %v358_v11 = vrot.slane %v329_v9, %v357_v5  ;;  %v351_v12 = vcombine.high %v329_v9, %v329_v9  ;;  %v343_v13 = vrot.slane %v321_v8, %v312_v63  ;;  %v336_v21 = vrot.slane %v320_v14, %v312_v63 }
 0x157   :  { %v322_v22 = vcombine.high %v320_v14, %v320_v14 }
 0x158   :  { %v396_v15 = vsel %vm1577_vm6, %v358_v11, -1e+30  ;;  %v395_v16 = vsel %vm1573_vm5, %v358_v11, -1e+30  ;;  %v366_v17 = vrot.slane %v351_v12, %v357_v5  ;;  %v362_v18 = vrot.slane %v343_v13, %v357_v5 }
 0x159   :  { %413 = vmax.xlane.f32.xlu1 %v396_v15  ;;  %411 = vmax.xlane.f32.xlu0 %v395_v16  ;;  %v374_v25 = vrot.slane %v336_v21, %v357_v5  ;;  %v353_v26 = vcombine.high %v343_v13, %v343_v13  ;;  %v350_v30 = vrot.slane %v322_v22, %v312_v63 }
 0x15a   :  { %v399_v19 = vsel %vm1573_vm5, %v366_v17, -1e+30  ;;  %v397_v20 = vsel %vm1573_vm5, %v362_v18, -1e+30  ;;  %v400_v23 = vsel %vm1577_vm6, %v366_v17, -1e+30  ;;  %v352_v34 = vcombine.high %v336_v21, %v336_v21 }
 0x15b   :  { %v398_v24 = vsel %vm1577_vm6, %v362_v18, -1e+30  ;;  %v404_v27 = vsel %vm1577_vm6, %v374_v25, -1e+30  ;;  %v403_v28 = vsel %vm1573_vm5, %v374_v25, -1e+30  ;;  %v370_v29 = vrot.slane %v353_v26, %v357_v5 }
 0x15c   :  { %v378_v33 = vrot.slane %v350_v30, %v357_v5  ;;  %v382_v37 = vrot.slane %v352_v34, %v357_v5  ;;  %v354_v38 = vcombine.high %v350_v30, %v350_v30 }
 0x15d   :  { %419 = vmax.xlane.f32.xlu1 %v399_v19  ;;  %415 = vmax.xlane.f32.xlu0 %v397_v20  ;;  %v1599_v31 = vsel %vm1577_vm6, %v370_v29, -1e+30  ;;  %v401_v32 = vsel %vm1573_vm5, %v370_v29, -1e+30 }
 0x15e   :  { %v1606_v35 = vsel %vm1577_vm6, %v378_v33, -1e+30  ;;  %v1610_v36 = vsel %vm1573_vm5, %v378_v33, -1e+30  ;;  %v1616_v39 = vsel %vm1577_vm6, %v382_v37, -1e+30  ;;  %v386_v41 = vrot.slane %v354_v38, %v357_v5 }
 0x15f   :  { %v1620_v40 = vsel %vm1573_vm5, %v382_v37, -1e+30 }
 0x160   :  { %v1626_v42 = vsel %vm1577_vm6, %v386_v41, -1e+30  ;;  %v1630_v43 = vsel %vm1573_vm5, %v386_v41, -1e+30 }
 0x161   :  { %421 = vmax.xlane.f32.xlu1 %v400_v23  ;;  %417 = vmax.xlane.f32.xlu0 %v398_v24 }
 0x165   :  { %429 = vmax.xlane.f32.xlu1 %v404_v27  ;;  %427 = vmax.xlane.f32.xlu0 %v403_v28 }
 0x169   :  { %425 = vmax.xlane.f32.xlu1 %v1599_v31  ;;  %423 = vmax.xlane.f32.xlu0 %v401_v32 }
 0x16d   :  { %433 = vmax.xlane.f32.xlu1 %v1606_v35  ;;  %431 = vmax.xlane.f32.xlu0 %v1610_v36 }
 0x171   :  { %437 = vmax.xlane.f32.xlu1 %v1616_v39  ;;  %435 = vmax.xlane.f32.xlu0 %v1620_v40 }
 0x175   :  { %441 = vmax.xlane.f32.xlu1 %v1626_v42  ;;  %439 = vmax.xlane.f32.xlu0 %v1630_v43 }
 0x1e6   :  { %v414_v44 = vpop.xlane.xlu1 %413  ;;  %v412_v45 = vpop.xlane.xlu0 %411 }
 0x1e7   :  { %v444_v46 = vsub.f32 %v396_v15, %v414_v44  ;;  %v443_v47 = vsub.f32 %v395_v16, %v412_v45 }
 0x1e9   :  { %v461_v48 = vmul.f32 1.442695, %v444_v46  ;;  %v459_v49 = vmul.f32 1.442695, %v443_v47 }
 0x1ea   :  { %v420_v50 = vpop.xlane.xlu1 %419  ;;  %v416_v51 = vpop.xlane.xlu0 %415 }
 0x1eb   :  { %1206 = vpow2.f32 %v461_v48  ;;  %v447_v52 = vsub.f32 %v399_v19, %v420_v50  ;;  %v445_v53 = vsub.f32 %v397_v20, %v416_v51 }
 0x1ec   :  { %1208 = vpow2.f32 %v459_v49 }
 0x1ed   :  { %v463_v54 = vmul.f32 1.442695, %v445_v53  ;;  %v467_v55 = vmul.f32 1.442695, %v447_v52 }
 0x1ee   :  { %v422_v56 = vpop.xlane.xlu1 %421  ;;  %v418_v57 = vpop.xlane.xlu0 %417 }
 0x1ef   :  { %v448_v58 = vsub.f32 %v400_v23, %v422_v56  ;;  %v446_v59 = vsub.f32 %v398_v24, %v418_v57  ;;  %1210 = vpow2.f32 %v463_v54 }
 0x1f0   :  { %1212 = vpow2.f32 %v467_v55 }
 0x1f1   :  { %v465_v60 = vmul.f32 1.442695, %v446_v59  ;;  %v469_v61 = vmul.f32 1.442695, %v448_v58 }
 0x1f2   :  { %v430_v62 = vpop.xlane.xlu1 %429  ;;  %v428_v63 = vpop.xlane.xlu0 %427 }
 0x1f3   :  { %v452_v2 = vsub.f32 %v404_v27, %v430_v62  ;;  %v451_v3 = vsub.f32 %v403_v28, %v428_v63  ;;  %1214 = vpow2.f32 %v465_v60  ;;  %v1721_v63 = vpop.f32.mrb[0].mxu1 }
 0x1f4   :  { %1216 = vpow2.f32 %v469_v61 }
 0x1f5   :  { %v1207_v4 = vpop.eup %1206  ;;  %v475_v1 = vmul.f32 1.442695, %v451_v3  ;;  %v477_v6 = vmul.f32 1.442695, %v452_v2  ;;  %v1027_v2 = vpop.f32.mrb[1].mxu1  ;;  %v651_v3 = vld [vmem:[#allocation8] sm:$0xff] }
 0x1f6   :  { %v1209_v5 = vpop.eup %1208  ;;  %v426_v8 = vpop.xlane.xlu1 %425  ;;  %v1636_v11 = vsel %vm1577_vm6, %v1207_v4, 0.0  ;;  %v652_v4 = vld [vmem:[#allocation8 + $0x8] sm:$0xff] }
 0x1f7   :  { %v424_v9 = vpop.xlane.xlu0 %423  ;;  %v450_v12 = vsub.f32 %v1599_v31, %v426_v8  ;;  %509 = vadd.xlane.f32.xlu1 %v1636_v11  ;;  %v1642_v14 = vsel %vm1573_vm5, %v1209_v5, 0.0  ;;  %1218 = vpow2.f32 %v475_v1  ;;  %v1147_v1 = vpack.c.bf16 %v652_v4, %v651_v3  ;;  %v654_v5 = vld [vmem:[#allocation8 + $0x18] sm:$0xff]  ;;  %v656_v8 = vld [vmem:[#allocation8 + $0x28] sm:$0xff] }
 0x1f8   :  { %v449_v13 = vsub.f32 %v401_v32, %v424_v9  ;;  %507 = vadd.xlane.f32.xlu0 %v1642_v14  ;;  %1220 = vpow2.f32 %v477_v6  ;;  %v1150_v6 = vpack.c.bf16 %v654_v5, %v653_v7  ;;  %v1153_v9 = vpack.c.bf16 %v656_v8, %v655_v10 }
 0x1f9   :  { %v1211_v16 = vpop.eup %1210  ;;  %v473_v17 = vmul.f32 1.442695, %v450_v12  ;;  %1148 = vmatpush3.bf16.msra.mxu0 %v1147_v1  ;;  %v657_v12 = vld [vmem:[#allocation8 + $0x30] sm:$0xff] }
 0x1fa   :  { %v471_v15 = vmul.f32 1.442695, %v449_v13  ;;  %v434_v18 = vpop.xlane.xlu1 %433  ;;  %v1649_v22 = vsel %vm1573_vm5, %v1211_v16, 0.0  ;;  %v1213_v23 = vpop.eup %1212  ;;  %1149 = vmatprep.subr.bf16.mxu0 %v1417_v0  ;;  %v658_v13 = vld [vmem:[#allocation8 + $0x38] sm:$0xff]  ;;  %v659_v16 = vld [vmem:[#allocation8 + $0x40] sm:$0xff] }
 0x1fb   :  { %v432_v19 = vpop.xlane.xlu0 %431  ;;  %v454_v20 = vsub.f32 %v1606_v35, %v434_v18  ;;  %v1660_v32 = vsel %vm1573_vm5, %v1213_v23, 0.0  ;;  %v663_v23 = vld [vmem:[#allocation8 + $0x60] sm:$0xff] }
 0x1fc   :  { %v453_v21 = vsub.f32 %v1610_v36, %v432_v19  ;;  %1222 = vpow2.f32 %v471_v15  ;;  %511 = vadd.xlane.f32.xlu0 %v1649_v22  ;;  %v1156_v15 = vpack.c.bf16 %v658_v13, %v657_v12  ;;  %v661_v19 = vld [vmem:[#allocation8 + $0x50] sm:$0xff] }
 0x1fd   :  { %v1215_v25 = vpop.eup %1214  ;;  %1224 = vpow2.f32 %v473_v17  ;;  %v481_v26 = vmul.f32 1.442695, %v454_v20  ;;  %1151 = vmatpush3.bf16.msra.mxu0 %v1150_v6  ;;  %v660_v17 = vld [vmem:[#allocation8 + $0x48] sm:$0xff]  ;;  %v662_v20 = vld [vmem:[#allocation8 + $0x58] sm:$0xff] }
 0x1fe   :  { %v479_v24 = vmul.f32 1.442695, %v453_v21  ;;  %v438_v27 = vpop.xlane.xlu1 %437  ;;  %v1656_v31 = vsel %vm1577_vm6, %v1215_v25, 0.0  ;;  %v1217_v33 = vpop.eup %1216  ;;  %1152 = vmatprep.subr.bf16.mxu0 %v1417_v0  ;;  %v1159_v18 = vpack.c.bf16 %v660_v17, %v659_v16  ;;  %v1162_v21 = vpack.c.bf16 %v662_v20, %v661_v19 }
 0x1ff   :  { %v436_v28 = vpop.xlane.xlu0 %435  ;;  %v456_v29 = vsub.f32 %v1616_v39, %v438_v27  ;;  %513 = vadd.xlane.f32.xlu1 %v1656_v31  ;;  %v1668_v41 = vsel %vm1577_vm6, %v1217_v33, 0.0  ;;  %v666_v27 = vld [vmem:[#allocation8 + $0x78] sm:$0xff]  ;;  %v777_v33 = vld [vmem:[#allocation10 + $0x10] sm:$0xff] }
 0x200   :  { %v455_v30 = vsub.f32 %v1620_v40, %v436_v28  ;;  %1226 = vpow2.f32 %v479_v24  ;;  %515 = vadd.xlane.f32.xlu0 %v1660_v32  ;;  %v664_v24 = vld [vmem:[#allocation8 + $0x68] sm:$0xff] }
 0x201   :  { %v1219_v35 = vpop.eup %1218  ;;  %1228 = vpow2.f32 %v481_v26  ;;  %v485_v36 = vmul.f32 1.442695, %v456_v29  ;;  %1154 = vmatpush3.bf16.msra.mxu0 %v1153_v9  ;;  %v1165_v25 = vpack.c.bf16 %v664_v24, %v663_v23  ;;  %v665_v26 = vld [vmem:[#allocation8 + $0x70] sm:$0xff]  ;;  %v775_v29 = vld [vmem:[#allocation10] sm:$0xff] }
 0x202   :  { %v483_v34 = vmul.f32 1.442695, %v455_v30  ;;  %v442_v37 = vpop.xlane.xlu1 %441  ;;  %v1672_v44 = vsel %vm1573_vm5, %v1219_v35, 0.0  ;;  %v1221_v45 = vpop.eup %1220  ;;  %1155 = vmatprep.subr.bf16.mxu0 %v1417_v0  ;;  %v1168_v28 = vpack.c.bf16 %v666_v27, %v665_v26  ;;  %v776_v30 = vld [vmem:[#allocation10 + $0x8] sm:$0xff]  ;;  %v778_v35 = vld [vmem:[#allocation10 + $0x18] sm:$0xff] }
 0x203   :  { %v440_v38 = vpop.xlane.xlu0 %439  ;;  %v458_v39 = vsub.f32 %v1626_v42, %v442_v37  ;;  %517 = vadd.xlane.f32.xlu1 %v1668_v41  ;;  %v779_v37 = vld [vmem:[#allocation10 + $0x20] sm:$0xff] }
 0x204   :  { %v457_v40 = vsub.f32 %v1630_v43, %v440_v38  ;;  %1230 = vpow2.f32 %v483_v34  ;;  %523 = vadd.xlane.f32.xlu0 %v1672_v44  ;;  %v1678_v43 = vsel %vm1577_vm6, %v1221_v45, 0.0  ;;  %v1171_v34 = vpack.c.bf16 %v776_v30, %v775_v29  ;;  %v780_v38 = vld [vmem:[#allocation10 + $0x28] sm:$0xff]  ;;  %v782_v45 = vld [vmem:[#allocation10 + $0x38] sm:$0xff] }
 0x205   :  { %1232 = vpow2.f32 %v485_v36  ;;  %v489_v42 = vmul.f32 1.442695, %v458_v39  ;;  %1157 = vmatpush3.bf16.msra.mxu0 %v1156_v15  ;;  %v1174_v36 = vpack.c.bf16 %v778_v35, %v777_v33  ;;  %v1177_v39 = vpack.c.bf16 %v780_v38, %v779_v37 }
 0x206   :  { %v487_v46 = vmul.f32 1.442695, %v457_v40  ;;  %v1223_v47 = vpop.eup %1222  ;;  %1158 = vmatprep.subr.bf16.mxu0 %v1417_v0  ;;  %1172 = vmatpush3.bf16.msra.mxu1 %v1171_v34  ;;  %v781_v40 = vld [vmem:[#allocation10 + $0x30] sm:$0xff] }
 0x207   :  { %v1682_v48 = vsel %vm1573_vm5, %v1223_v47, 0.0  ;;  %v1225_v49 = vpop.eup %1224  ;;  %525 = vadd.xlane.f32.xlu1 %v1678_v43  ;;  %1173 = vmatprep.subr.bf16.mxu1 %v1417_v0  ;;  %v783_v47 = vld [vmem:[#allocation10 + $0x40] sm:$0xff] }
 0x208   :  { %1234 = vpow2.f32 %v487_v46  ;;  %519 = vadd.xlane.f32.xlu0 %v1682_v48  ;;  %v1688_v51 = vsel %vm1577_vm6, %v1225_v49, 0.0  ;;  %v1180_v46 = vpack.c.bf16 %v782_v45, %v781_v40 }
 0x209   :  { %1236 = vpow2.f32 %v489_v42  ;;  %1160 = vmatpush3.bf16.msra.mxu0 %v1159_v18  ;;  %v784_v42 = vld [vmem:[#allocation10 + $0x48] sm:$0xff] }
 0x20a   :  { %v1227_v50 = vpop.eup %1226  ;;  %1161 = vmatprep.subr.bf16.mxu0 %v1417_v0  ;;  %1175 = vmatpush3.bf16.msra.mxu1 %v1174_v36  ;;  %v1183_v49 = vpack.c.bf16 %v784_v42, %v783_v47 }
 0x20b   :  { %v1692_v52 = vsel %vm1573_vm5, %v1227_v50, 0.0  ;;  %v1229_v53 = vpop.eup %1228  ;;  %521 = vadd.xlane.f32.xlu1 %v1688_v51  ;;  %1176 = vmatprep.subr.bf16.mxu1 %v1417_v0  ;;  %v785_v50 = vld [vmem:[#allocation10 + $0x50] sm:$0xff] }
 0x20c   :  { %527 = vadd.xlane.f32.xlu0 %v1692_v52  ;;  %v1698_v55 = vsel %vm1577_vm6, %v1229_v53, 0.0  ;;  %v786_v53 = vld [vmem:[#allocation10 + $0x58] sm:$0xff] }
 0x20d   :  { %1163 = vmatpush3.bf16.msra.mxu0 %v1162_v21 }
 0x20e   :  { %v1231_v54 = vpop.eup %1230  ;;  %1164 = vmatprep.subr.bf16.mxu0 %v1417_v0  ;;  %1178 = vmatpush3.bf16.msra.mxu1 %v1177_v39 }
 0x20f   :  { %v1702_v56 = vsel %vm1573_vm5, %v1231_v54, 0.0  ;;  %v1233_v57 = vpop.eup %1232  ;;  %529 = vadd.xlane.f32.xlu1 %v1698_v55  ;;  %1179 = vmatprep.subr.bf16.mxu1 %v1417_v0  ;;  %v1186_v54 = vpack.c.bf16 %v786_v53, %v785_v50 }
 0x210   :  { %531 = vadd.xlane.f32.xlu0 %v1702_v56  ;;  %v1708_v59 = vsel %vm1577_vm6, %v1233_v57, 0.0  ;;  %v787_v57 = vld [vmem:[#allocation10 + $0x60] sm:$0xff] }
 0x211   :  { %1166 = vmatpush3.bf16.msra.mxu0 %v1165_v25 }
 0x212   :  { %v1235_v58 = vpop.eup %1234  ;;  %1167 = vmatprep.subr.bf16.mxu0 %v1417_v0  ;;  %1181 = vmatpush3.bf16.msra.mxu1 %v1180_v46 }
 0x213   :  { %v1712_v60 = vsel %vm1573_vm5, %v1235_v58, 0.0  ;;  %v1237_v61 = vpop.eup %1236  ;;  %533 = vadd.xlane.f32.xlu1 %v1708_v59  ;;  %1182 = vmatprep.subr.bf16.mxu1 %v1417_v0  ;;  %v788_v58 = vld [vmem:[#allocation10 + $0x68] sm:$0xff] }
 0x214   :  { %535 = vadd.xlane.f32.xlu0 %v1712_v60  ;;  %v1718_v62 = vsel %vm1577_vm6, %v1237_v61, 0.0  ;;  %v1189_v61 = vpack.c.bf16 %v788_v58, %v787_v57 }
 0x215   :  { %1169 = vmatpush3.bf16.msra.mxu0 %v1168_v28 }
 0x216   :  { %1184 = vmatpush3.bf16.msra.mxu1 %v1183_v49 }
 0x217   :  { %537 = vadd.xlane.f32.xlu1 %v1718_v62  ;;  %1185 = vmatprep.subr.bf16.mxu1 %v1417_v0 }
 0x21a   :  { %1187 = vmatpush3.bf16.msra.mxu1 %v1186_v54 }
 0x21b   :  { %1188 = vmatprep.subr.bf16.mxu1 %v1417_v0 }
 0x21e   :  { %1190 = vmatpush3.bf16.msra.mxu1 %v1189_v61 }
 0x21f   :  { %1191 = vmatprep.subr.bf16.mxu1 %v1417_v0 }
 0x284   :  { %v510_v3 = vpop.xlane.xlu1 %509 }
 0x285   :  { %v508_v2 = vpop.xlane.xlu0 %507  ;;  %1238 = vrcp.f32 %v510_v3 }
 0x289   :  { %v512_v4 = vpop.xlane.xlu0 %511 }
 0x28a   :  { %1240 = vrcp.f32 %v512_v4 }
 0x28b   :  { %1242 = vrcp.f32 %v508_v2 }
 0x28c   :  { %v514_v1 = vpop.xlane.xlu1 %513 }
 0x28d   :  { %v516_v7 = vpop.xlane.xlu0 %515  ;;  %1244 = vrcp.f32 %v514_v1 }
 0x28e   :  { %1246 = vrcp.f32 %v516_v7 }
 0x28f   :  { %v1239_v10 = vpop.eup %1238 }
 0x290   :  { %v518_v5 = vpop.xlane.xlu1 %517  ;;  %v542_v20 = vmul.f32 %v1239_v10, %v1636_v11 }
 0x291   :  { %v524_v6 = vpop.xlane.xlu0 %523  ;;  %1248 = vrcp.f32 %v518_v5 }
 0x292   :  { %1250 = vrcp.f32 %v524_v6 }
 0x294   :  { %v526_v8 = vpop.xlane.xlu1 %525  ;;  %v1241_v12 = vpop.eup %1240 }
 0x295   :  { %v520_v9 = vpop.xlane.xlu0 %519  ;;  %1252 = vrcp.f32 %v526_v8  ;;  %v1243_v0 = vpop.eup %1242  ;;  %v544_v15 = vmul.f32 %v1241_v12, %v1649_v22 }
 0x296   :  { %1254 = vrcp.f32 %v520_v9  ;;  %v540_v21 = vmul.f32 %v1243_v0, %v1642_v14 }
 0x297   :  { %v1245_v13 = vpop.eup %1244 }
 0x298   :  { %v546_v16 = vmul.f32 %v1245_v13, %v1656_v31  ;;  %v522_v17 = vpop.xlane.xlu1 %521  ;;  %v1247_v19 = vpop.eup %1246  ;;  %v571_v31 = vadd.f32 %v542_v20, %v540_v21 }
 0x299   :  { %v528_v18 = vpop.xlane.xlu0 %527  ;;  %1256 = vrcp.f32 %v522_v17  ;;  %v548_v26 = vmul.f32 %v1247_v19, %v1660_v32 }
 0x29a   :  { %v578_v23 = vadd.f32 %v546_v16, %v544_v15  ;;  %1258 = vrcp.f32 %v528_v18  ;;  %v572_v32 = vrot.slane %v571_v31, 4 }
 0x29b   :  { %v1249_v24 = vpop.eup %1248 }
 0x29c   :  { %v579_v25 = vrot.slane %v578_v23, 4  ;;  %v550_v27 = vmul.f32 %v1249_v24, %v1668_v41  ;;  %v530_v28 = vpop.xlane.xlu1 %529  ;;  %v1251_v29 = vpop.eup %1250 }
 0x29d   :  { %v532_v22 = vpop.xlane.xlu0 %531  ;;  %1260 = vrcp.f32 %v530_v28  ;;  %v556_v14 = vmul.f32 %v1251_v29, %v1672_v44  ;;  %v573_v44 = vadd.f32 %v572_v32, %v571_v31 }
 0x29e   :  { %v585_v30 = vadd.f32 %v550_v27, %v548_v26  ;;  %v580_v34 = vadd.f32 %v579_v25, %v578_v23  ;;  %1262 = vrcp.f32 %v532_v22 }
 0x29f   :  { %v1253_v33 = vpop.eup %1252  ;;  %v574_v1 = vrot.slane %v573_v44, 2 }
 0x2a0   :  { %v586_v11 = vrot.slane %v585_v30, 4  ;;  %v558_v35 = vmul.f32 %v1253_v33, %v1678_v43  ;;  %v534_v36 = vpop.xlane.xlu1 %533  ;;  %v1255_v38 = vpop.eup %1254  ;;  %v581_v45 = vrot.slane %v580_v34, 2 }
 0x2a1   :  { %v536_v37 = vpop.xlane.xlu0 %535  ;;  %1264 = vrcp.f32 %v534_v36  ;;  %v552_v47 = vmul.f32 %v1255_v38, %v1682_v48 }
 0x2a2   :  { %v587_v41 = vadd.f32 %v586_v11, %v585_v30  ;;  %v599_v39 = vadd.f32 %v558_v35, %v556_v14  ;;  %1266 = vrcp.f32 %v536_v37  ;;  %v582_v57 = vadd.f32 %v581_v45, %v580_v34 }
 0x2a3   :  { %v1257_v40 = vpop.eup %1256 }
 0x2a4   :  { %v600_v46 = vrot.slane %v599_v39, 4  ;;  %v554_v42 = vmul.f32 %v1257_v40, %v1688_v51  ;;  %v538_v49 = vpop.xlane.xlu1 %537  ;;  %v1259_v50 = vpop.eup %1258  ;;  %v588_v53 = vrot.slane %v587_v41, 2  ;;  %v887_v51 = vld [vmem:[%s1779_s4] ss:$0 sm:$0xff]  ;;  %v583_v10 = vrot.slane %v582_v57, 1 }
 0x2a5   :  { %1268 = vrcp.f32 %v538_v49  ;;  %v560_v2 = vmul.f32 %v1259_v50, %v1692_v52  ;;  %v283_v16 = vadd.f32 %v887_v51, %v1721_v63 }
 0x2a6   :  { %v592_v43 = vadd.f32 %v554_v42, %v552_v47  ;;  %v601_v58 = vadd.f32 %v600_v46, %v599_v39  ;;  %v589_v7 = vadd.f32 %v588_v53, %v587_v41  ;;  %v584_v21 = vadd.f32 %v583_v10, %v582_v57 }
 0x2a7   :  { %v1261_v54 = vpop.eup %1260  ;;  %v628_v25 = vrot.slane %v283_v16, 1  ;;  %v629_v29 = vrot.slane %v283_v16, 2  ;;  %v630_v31 = vrot.slane %v283_v16, 3  ;;  %v632_v38 = vrot.slane %v283_v16, 5 }
 0x2a8   :  { %v593_v61 = vrot.slane %v592_v43, 4  ;;  %v562_v3 = vmul.f32 %v1261_v54, %v1698_v55  ;;  %v1263_v4 = vpop.eup %1262  ;;  %v602_v8 = vrot.slane %v601_v58, 2  ;;  %v575_v55 = vadd.f32 %v574_v1, %v573_v44 }
 0x2a9   :  { %v564_v13 = vmul.f32 %v1263_v4, %v1702_v56  ;;  %v590_v15 = vrot.slane %v589_v7, 1  ;;  %v644_v37 = vmul.f32 %v628_v25, %v584_v21  ;;  %v631_v46 = vrot.slane %v283_v16, 4 }
 0x2aa   :  { %v594_v48 = vadd.f32 %v593_v61, %v592_v43  ;;  %v606_v5 = vadd.f32 %v562_v3, %v560_v2  ;;  %v603_v23 = vadd.f32 %v602_v8, %v601_v58  ;;  %v576_v22 = vrot.slane %v575_v55, 1 }
 0x2ab   :  { %v1265_v6 = vpop.eup %1264  ;;  %v682_v49 = vrot.slane %v644_v37, 7  ;;  %v633_v50 = vrot.slane %v283_v16, 6  ;;  %v634_v1 = vrot.slane %v283_v16, 7 }
 0x2ac   :  { %v1267_v9 = vpop.eup %1266  ;;  %v595_v12 = vrot.slane %v594_v48, 2  ;;  %v607_v0 = vrot.slane %v606_v5, 4  ;;  %v566_v52 = vmul.f32 %v1265_v6, %v1708_v59  ;;  %v591_v59 = vadd.f32 %v590_v15, %v589_v7  ;;  %v790_v15 = vld [vmem:[#allocation10 + $0x78] sm:$0xff] }
 0x2ad   :  { %v568_v24 = vmul.f32 %v1267_v9, %v1712_v60  ;;  %v604_v11 = vrot.slane %v603_v23, 1  ;;  %v577_v60 = vadd.f32 %v576_v22, %v575_v55  ;;  %v789_v55 = vld [vmem:[#allocation10 + $0x70] sm:$0xff] }
 0x2ae   :  { %v596_v17 = vadd.f32 %v595_v12, %v594_v48  ;;  %v608_v18 = vadd.f32 %v607_v0, %v606_v5  ;;  %v613_v19 = vadd.f32 %v566_v52, %v564_v13  ;;  %v645_v32 = vmul.f32 %v629_v29, %v591_v59 }
 0x2af   :  { %v1269_v20 = vpop.eup %1268  ;;  %v605_v45 = vadd.f32 %v604_v11, %v603_v23  ;;  %v643_v44 = vmul.f32 %v577_v60, %v283_v16  ;;  %v1192_v16 = vpack.c.bf16 %v790_v15, %v789_v55  ;;  %v889_v23 = vld [vmem:[%s1783_s8] ss:$0 sm:$0xff] }
 0x2b0   :  { %v597_v26 = vrot.slane %v596_v17, 1  ;;  %v609_v27 = vrot.slane %v608_v18, 2  ;;  %v614_v28 = vrot.slane %v613_v19, 4  ;;  %v570_v56 = vmul.f32 %v1269_v20, %v1718_v62 }
 0x2b1   :  { %v685_v53 = vrot.slane %v645_v32, 6  ;;  %v647_v61 = vmul.f32 %v631_v46, %v605_v45  ;;  %v684_v4 = vsel %vm683_vm7, %v682_v49, %v643_v44  ;;  %1193 = vmatpush3.bf16.msra.mxu1 %v1192_v16 }
 0x2b2   :  { %v615_v30 = vadd.f32 %v614_v28, %v613_v19  ;;  %v620_v63 = vadd.f32 %v570_v56, %v568_v24  ;;  %v598_v33 = vadd.f32 %v597_v26, %v596_v17  ;;  %v610_v34 = vadd.f32 %v609_v27, %v608_v18  ;;  %v888_v17 = vld [vmem:[%s1781_s6] ss:$0 sm:$0xff] }
 0x2b3   :  { %v687_v7 = vsel %vm686_vm8, %v685_v53, %v684_v4  ;;  %v691_v6 = vrot.slane %v647_v61, 4 }
 0x2b4   :  { %v621_v14 = vrot.slane %v620_v63, 4  ;;  %v611_v35 = vrot.slane %v610_v34, 1  ;;  %v616_v36 = vrot.slane %v615_v30, 2  ;;  %v646_v62 = vmul.f32 %v630_v31, %v598_v33 }
 0x2b6   :  { %v612_v41 = vadd.f32 %v611_v35, %v610_v34  ;;  %v617_v39 = vadd.f32 %v616_v36, %v615_v30  ;;  %v622_v40 = vadd.f32 %v621_v14, %v620_v63  ;;  %v688_v58 = vrot.slane %v646_v62, 5 }
 0x2b8   :  { %v618_v47 = vrot.slane %v617_v39, 1  ;;  %v623_v42 = vrot.slane %v622_v40, 2  ;;  %v648_v57 = vmul.f32 %v632_v38, %v612_v41  ;;  %v690_v5 = vsel %vm689_vm9, %v688_v58, %v687_v7 }
 0x2b9   :  { %v693_v9 = vsel %vm692_vm10, %v691_v6, %v690_v5 }
 0x2ba   :  { %v619_v43 = vadd.f32 %v618_v47, %v617_v39  ;;  %v624_v54 = vadd.f32 %v623_v42, %v622_v40  ;;  %v694_v51 = vrot.slane %v648_v57, 3 }
 0x2bc   :  { %v625_v2 = vrot.slane %v624_v54, 1  ;;  %v649_v3 = vmul.f32 %v633_v50, %v619_v43  ;;  %v696_v12 = vsel %vm695_vm11, %v694_v51, %v693_v9 }
 0x2be   :  { %v626_v48 = vadd.f32 %v625_v2, %v624_v54  ;;  %v697_v10 = vrot.slane %v649_v3, 2 }
 0x2c0   :  { %v650_v8 = vmul.f32 %v634_v1, %v626_v48  ;;  %v699_v13 = vsel %vm698_vm12, %v697_v10, %v696_v12 }
 0x2c2   :  { %v700_v0 = vrot.slane %v650_v8, 1 }
 0x2c4   :  { %v702_v52 = vsel %vm701_vm13, %v700_v0, %v699_v13 }
 0x2c5   :  { %1061 = vmatmul.mubr.f32.vlgmr.msra.gmra.mrb[2].mxu0 %v702_v52 }
 0x398   :  { %v770_v18 = vpop.f32.mrb[2].mxu0 }
 0x399   :  { %v771_v19 = vadd.f32 %v888_v17, %v770_v18  ;;  %v1062_v20 = vpop.f32.mrb[3].mxu0 }
 0x39b   :  { %v774_v21 = vmax.f32 %v771_v19, 0.0 }
 0x39d   :  { %1096 = vmatmul.mubr.f32.vlgmr.msra.gmra.mrb[2].mxu1 %v774_v21 }
 0x470   :  { %v864_v24 = vpop.f32.mrb[2].mxu1 }
 0x471   :  { %v865_v25 = vadd.f32 %v889_v23, %v864_v24  ;;  %v1097_v26 = vpop.f32.mrb[3].mxu1 }
 0x473   :  { %868 = vst [vmem:[#allocation11] sm:$0xff] %v865_v25 }
 0x474   :  { %1391 = shalt.err (!%p1388_p2)
}
 0x475   :  { %s1392_s10 = scalar_lea.hbm %s1784_s9, 128 }
 0x476   :  { %p1393_p3 = scmp.ne.s32.totalorder %s1784_s9, %s1392_s10  ;;  %p1396_p4 = scmp.lt.u32.totalorder %s1392_s10, %s1784_s9 }
 0x478   :  { %p1398_p5 = pnand %p1396_p4, %p1393_p3 }
 0x47a   :  { %1401 = shalt.err (!%p1398_p5)
}
 0x47b   :  { %878 = dma.vmem_to_hbm [thread:$0]  %s876_s12, 128, %s1784_s9, [#allocation4]  }
 0x47c   :  { %1408 = dma.done.wait [#allocation4], 128  }
 0x47d   :  { %1409 = vsyncadd [#allocation4], 4294967168 }
 0x47e   :  { %882 = vsyncpa [#allocation3], 1 }
 0x47f   :  { %883 = vsyncpa [#allocation6], 1 }
 0x480   :  { %884 = vsyncpa [#allocation9], 1 }
 0x481   :  { %885 = vsyncpa [#allocation4], 1 }

</bundles_post_ra>
